<compile_context>
chip_gen: v7x
topology: tpu7x:2x2x1
jax: 0.10.0
libtpu: 0.0.40
codegen_flags: <defaults>
</compile_context>

<pallas_src>
import functools

import jax
import jax.numpy as jnp
from jax.experimental import pallas as pl
from jax.experimental.pallas import tpu as pltpu

LATENT = 32
HIDDEN = 64
NUM_LAYERS = 5            # -> 4 hidden (Linear+BN+ReLU+Dropout) blocks + final Linear+Tanh
NUM_HIDDEN = NUM_LAYERS - 1
PERTURBATION_SCALE = 5.0
BN_EPS = 1e-5

# Row offsets of each (folded) weight inside the packed slab.
_W_ROWS = [LATENT] + [HIDDEN] * (NUM_HIDDEN - 1) + [HIDDEN]    # 32,64,64,64,64 -> 288 rows
_W_OFFS = [sum(_W_ROWS[:i]) for i in range(len(_W_ROWS) + 1)]  # 0,32,96,160,224,288
_B_OFF = _W_OFFS[-1]                                            # bias rows start at 288
_B_ROWS_PADDED = 8                                              # 5 biases padded to 8 rows
_SLAB_ROWS = _B_OFF + _B_ROWS_PADDED                            # 296


def _adv_gen_kernel(z_ref, p_ref, out_ref):
    """z_ref: (TB, LATENT); p_ref: (296, HIDDEN) packed params; out_ref: (TB, LATENT)."""
    x = z_ref[...].astype(jnp.float32)
    param_dtype = p_ref.dtype
    h = x
    # Hidden blocks: Linear (eval-BN already folded into W/b) + ReLU. Dropout = identity.
    for i in range(NUM_HIDDEN):
        w = p_ref[_W_OFFS[i]:_W_OFFS[i + 1], :]                     # static slice -> free view
        b = p_ref[_B_OFF + i:_B_OFF + i + 1, :].astype(jnp.float32)  # (1, HIDDEN)
        acc = jnp.dot(h.astype(param_dtype), w,
                      preferred_element_type=jnp.float32) + b
        h = jnp.maximum(acc, 0.0)
    # Final Linear (output cols zero-padded to HIDDEN) + Tanh.  Kept in f32 operands
    # even when the slab is bf16 so the 1e-4 check vs. the f32 reference holds.
    wf = p_ref[_W_OFFS[NUM_HIDDEN]:_W_OFFS[NUM_HIDDEN + 1], :].astype(jnp.float32)
    bf = p_ref[_B_OFF + NUM_HIDDEN:_B_OFF + NUM_HIDDEN + 1, :].astype(jnp.float32)
    p_full = jnp.tanh(jnp.dot(h, wf, preferred_element_type=jnp.float32) + bf)
    p = p_full[:, :LATENT]
    out_ref[...] = (x + p * PERTURBATION_SCALE).astype(out_ref.dtype)


def init_params(key, latent=LATENT, hidden=HIDDEN, num_hidden=NUM_HIDDEN):
    """Deterministic raw parameter init (shapes match the PyTorch module, eval mode)."""
    params = []
    in_dim = latent
    for _ in range(num_hidden):
        key, kw, kb, kg, kbe, km, kv = jax.random.split(key, 7)
        scale = 1.0 / jnp.sqrt(jnp.float32(in_dim))
        # stored as (in, out) == W^T of the PyTorch (out, in) weight
        w = jax.random.uniform(kw, (in_dim, hidden), jnp.float32, -scale, scale)
        b = jax.random.uniform(kb, (1, hidden), jnp.float32, -scale, scale)
        gamma = 1.0 + 0.1 * jax.random.normal(kg, (1, hidden), jnp.float32)
        beta = 0.1 * jax.random.normal(kbe, (1, hidden), jnp.float32)
        r_mean = 0.05 * jax.random.normal(km, (1, hidden), jnp.float32)
        r_var = 1.0 + 0.1 * jax.random.uniform(kv, (1, hidden), jnp.float32)
        params += [w, b, gamma, beta, r_mean, r_var]
        in_dim = hidden
    key, kw, kb = jax.random.split(key, 3)
    scale = 1.0 / jnp.sqrt(jnp.float32(in_dim))
    wf = jax.random.uniform(kw, (in_dim, latent), jnp.float32, -scale, scale)
    bf = jax.random.uniform(kb, (1, latent), jnp.float32, -scale, scale)
    params += [wf, bf]
    return params


def pack_params(params, compute_dtype=jnp.float32):
    """Fold eval-mode BatchNorm into Linear weights/bias and pack everything into ONE slab.

    Call this ONCE per parameter set (it is hoisted out of the forward path).
    Set compute_dtype=jnp.bfloat16 on v6e/v7x for large-batch MXU throughput
    (the final tanh layer is always computed with f32 operands in-kernel).
    """
    ws, bs = [], []
    idx = 0
    for _ in range(NUM_HIDDEN):
        w, b, g, beta, mean, var = params[idx:idx + 6]
        idx += 6
        scale = g * jax.lax.rsqrt(var + BN_EPS)            # (1, HIDDEN)
        ws.append(w * scale)                               # (in, HIDDEN)
        bs.append((b - mean) * scale + beta)               # (1, HIDDEN)
    wf, bf = params[idx], params[idx + 1]                  # (HIDDEN, LATENT), (1, LATENT)
    wf_pad = jnp.pad(wf, ((0, 0), (0, HIDDEN - LATENT)))   # zero-pad output cols to HIDDEN
    bf_pad = jnp.pad(bf, ((0, 0), (0, HIDDEN - LATENT)))
    pad_rows = _B_ROWS_PADDED - (NUM_HIDDEN + 1)
    slab = jnp.concatenate(
        ws + [wf_pad] + bs + [bf_pad, jnp.zeros((pad_rows, HIDDEN), jnp.float32)],
        axis=0)                                            # (296, 64)
    return slab.astype(compute_dtype)


def _pick_batch_tile(batch):
    """Largest divisor tile <= 2048, capped so big batches produce multiple grid steps
    (>=2 when batch >= 64, >=4 when batch >= 256) -> both TCs busy on megacore chips."""
    if batch >= 256:
        cap = batch // 4
    elif batch >= 64:
        cap = batch // 2
    else:
        cap = batch
    for cand in (2048, 1024, 512, 256, 128, 64, 32, 16, 8):
        if cand <= cap and batch % cand == 0:
            return cand
    return batch   # fallback: single step, block == full array (always legal)


@jax.jit
def adversarial_generator_forward(z, param_slab):
    """z: (batch, LATENT); param_slab: output of pack_params()."""
    batch, latent = z.shape
    assert latent == LATENT
    tb = _pick_batch_tile(batch)
    grid = (batch // tb,)

    flops = 2 * batch * (LATENT * HIDDEN + (NUM_HIDDEN - 1) * HIDDEN * HIDDEN
                         + HIDDEN * HIDDEN)
    bytes_accessed = (2 * batch * LATENT) * 4 + param_slab.size * param_slab.dtype.itemsize
    cost = pl.CostEstimate(flops=flops,
                           transcendentals=batch * HIDDEN,
                           bytes_accessed=bytes_accessed)

    return pl.pallas_call(
        _adv_gen_kernel,
        out_shape=jax.ShapeDtypeStruct(z.shape, z.dtype),
        grid=grid,
        in_specs=[
            pl.BlockSpec((tb, LATENT), lambda i: (i, 0)),
            pl.BlockSpec(param_slab.shape, lambda i: (0, 0)),   # grid-invariant param slab
        ],
        out_specs=pl.BlockSpec((tb, LATENT), lambda i: (i, 0)),
        compiler_params=pltpu.CompilerParams(
            dimension_semantics=("parallel",)),
        cost_estimate=cost,
    )(z, param_slab)


def _reference_forward(z, params):
    """Plain-JAX reference (unfused Linear + BN eval + ReLU, final Linear + Tanh)."""
    x = z.astype(jnp.float32)
    h = x
    idx = 0
    for _ in range(NUM_HIDDEN):
        w, b, g, beta, mean, var = params[idx:idx + 6]
        idx += 6
        h = h @ w + b
        h = (h - mean) / jnp.sqrt(var + BN_EPS) * g + beta
        h = jnp.maximum(h, 0.0)
    wf, bf = params[idx], params[idx + 1]
    p = jnp.tanh(h @ wf + bf)
    return (x + p * PERTURBATION_SCALE).astype(z.dtype)


if __name__ == "__main__":
    key = jax.random.PRNGKey(0)
    kz, kp = jax.random.split(key)

    batch = 8
    z = jax.random.normal(kz, (batch, LATENT), jnp.float32)
    params = init_params(kp)

    # Fold + pack ONCE (hoisted out of the forward path).
    param_slab = jax.block_until_ready(pack_params(params))

    out = adversarial_generator_forward(z, param_slab)
    out = jax.block_until_ready(out)

    ref = _reference_forward(z, params)
    assert out.shape == z.shape and out.dtype == z.dtype
    assert jnp.allclose(out, ref, atol=1e-4, rtol=1e-4), "mismatch vs reference"

    # TODO(synk): projection / projection-transpose branch and use_random_noise
    # branch are not instantiated under the default config, so they are omitted.
    # TODO(synk): lane-dense (N=128) padding of the packed layers is a possible
    # large-batch micro-opt; only worth it if xprof shows masked vst pressure.
    print("KERNEL_OK")
</pallas_src>

<mosaic_0001>
module attributes {stable_mosaic.version = 11 : i64} {
  func.func @_adv_gen_kernel(%arg0: i32, %arg1: memref<8x32xf32, #tpu.memory_space<vmem>>, %arg2: memref<296x64xf32, #tpu.memory_space<vmem>>, %arg3: memref<8x32xf32, #tpu.memory_space<vmem>>) attributes {dimension_semantics = [#tpu.dimension_semantics<parallel>], iteration_bounds = array<i64: 1>, scalar_prefetch = 0 : i64, scratch_operands = 0 : i64, tpu.core_type = #tpu.core_type<tc>, window_params = [{transform_indices = @transform_0, window_bounds = array<i64: 8, 32>}, {pipeline_mode = #tpu.pipeline_mode<synchronous>, transform_indices = @transform_1, window_bounds = array<i64: 296, 64>}, {transform_indices = @transform_2, window_bounds = array<i64: 8, 32>}]} {
    %c0 = arith.constant 0 : index
    %c0_0 = arith.constant 0 : index
    %0 = vector.load %arg1[%c0, %c0_0] : memref<8x32xf32, #tpu.memory_space<vmem>>, vector<8x32xf32>
    %c0_1 = arith.constant 0 : index
    %c0_2 = arith.constant 0 : index
    %1 = vector.load %arg2[%c0_1, %c0_2] : memref<296x64xf32, #tpu.memory_space<vmem>>, vector<32x64xf32>
    %c288 = arith.constant 288 : index
    %c0_3 = arith.constant 0 : index
    %2 = vector.load %arg2[%c288, %c0_3] : memref<296x64xf32, #tpu.memory_space<vmem>>, vector<1x64xf32>
    %cst = arith.constant dense<0.000000e+00> : vector<8x64xf32>
    %3 = tpu.matmul %0, %1, %cst {dimension_numbers = #tpu.dot_dimension_numbers<[1], [0], [0], [1], [0, 0, 1, 1], [], []>} : vector<8x32xf32>, vector<32x64xf32>, vector<8x64xf32> -> vector<8x64xf32>
    %4 = vector.broadcast %2 : vector<1x64xf32> to vector<8x64xf32>
    %5 = arith.addf %3, %4 : vector<8x64xf32>
    %cst_4 = arith.constant 0.000000e+00 : f32
    %6 = vector.broadcast %cst_4 : f32 to vector<8x64xf32>
    %7 = arith.maximumf %5, %6 : vector<8x64xf32>
    %c32 = arith.constant 32 : index
    %c0_5 = arith.constant 0 : index
    %8 = vector.load %arg2[%c32, %c0_5] : memref<296x64xf32, #tpu.memory_space<vmem>>, vector<64x64xf32>
    %c289 = arith.constant 289 : index
    %c0_6 = arith.constant 0 : index
    %9 = vector.load %arg2[%c289, %c0_6] : memref<296x64xf32, #tpu.memory_space<vmem>>, vector<1x64xf32>
    %cst_7 = arith.constant dense<0.000000e+00> : vector<8x64xf32>
    %10 = tpu.matmul %7, %8, %cst_7 {dimension_numbers = #tpu.dot_dimension_numbers<[1], [0], [0], [1], [0, 0, 1, 1], [], []>} : vector<8x64xf32>, vector<64x64xf32>, vector<8x64xf32> -> vector<8x64xf32>
    %11 = vector.broadcast %9 : vector<1x64xf32> to vector<8x64xf32>
    %12 = arith.addf %10, %11 : vector<8x64xf32>
    %cst_8 = arith.constant 0.000000e+00 : f32
    %13 = vector.broadcast %cst_8 : f32 to vector<8x64xf32>
    %14 = arith.maximumf %12, %13 : vector<8x64xf32>
    %c96 = arith.constant 96 : index
    %c0_9 = arith.constant 0 : index
    %15 = vector.load %arg2[%c96, %c0_9] : memref<296x64xf32, #tpu.memory_space<vmem>>, vector<64x64xf32>
    %c290 = arith.constant 290 : index
    %c0_10 = arith.constant 0 : index
    %16 = vector.load %arg2[%c290, %c0_10] : memref<296x64xf32, #tpu.memory_space<vmem>>, vector<1x64xf32>
    %cst_11 = arith.constant dense<0.000000e+00> : vector<8x64xf32>
    %17 = tpu.matmul %14, %15, %cst_11 {dimension_numbers = #tpu.dot_dimension_numbers<[1], [0], [0], [1], [0, 0, 1, 1], [], []>} : vector<8x64xf32>, vector<64x64xf32>, vector<8x64xf32> -> vector<8x64xf32>
    %18 = vector.broadcast %16 : vector<1x64xf32> to vector<8x64xf32>
    %19 = arith.addf %17, %18 : vector<8x64xf32>
    %cst_12 = arith.constant 0.000000e+00 : f32
    %20 = vector.broadcast %cst_12 : f32 to vector<8x64xf32>
    %21 = arith.maximumf %19, %20 : vector<8x64xf32>
    %c160 = arith.constant 160 : index
    %c0_13 = arith.constant 0 : index
    %22 = vector.load %arg2[%c160, %c0_13] : memref<296x64xf32, #tpu.memory_space<vmem>>, vector<64x64xf32>
    %c291 = arith.constant 291 : index
    %c0_14 = arith.constant 0 : index
    %23 = vector.load %arg2[%c291, %c0_14] : memref<296x64xf32, #tpu.memory_space<vmem>>, vector<1x64xf32>
    %cst_15 = arith.constant dense<0.000000e+00> : vector<8x64xf32>
    %24 = tpu.matmul %21, %22, %cst_15 {dimension_numbers = #tpu.dot_dimension_numbers<[1], [0], [0], [1], [0, 0, 1, 1], [], []>} : vector<8x64xf32>, vector<64x64xf32>, vector<8x64xf32> -> vector<8x64xf32>
    %25 = vector.broadcast %23 : vector<1x64xf32> to vector<8x64xf32>
    %26 = arith.addf %24, %25 : vector<8x64xf32>
    %cst_16 = arith.constant 0.000000e+00 : f32
    %27 = vector.broadcast %cst_16 : f32 to vector<8x64xf32>
    %28 = arith.maximumf %26, %27 : vector<8x64xf32>
    %c224 = arith.constant 224 : index
    %c0_17 = arith.constant 0 : index
    %29 = vector.load %arg2[%c224, %c0_17] : memref<296x64xf32, #tpu.memory_space<vmem>>, vector<64x64xf32>
    %c292 = arith.constant 292 : index
    %c0_18 = arith.constant 0 : index
    %30 = vector.load %arg2[%c292, %c0_18] : memref<296x64xf32, #tpu.memory_space<vmem>>, vector<1x64xf32>
    %cst_19 = arith.constant dense<0.000000e+00> : vector<8x64xf32>
    %31 = tpu.matmul %28, %29, %cst_19 {dimension_numbers = #tpu.dot_dimension_numbers<[1], [0], [0], [1], [0, 0, 1, 1], [], []>} : vector<8x64xf32>, vector<64x64xf32>, vector<8x64xf32> -> vector<8x64xf32>
    %32 = vector.broadcast %30 : vector<1x64xf32> to vector<8x64xf32>
    %33 = arith.addf %31, %32 : vector<8x64xf32>
    %34 = math.tanh %33 : vector<8x64xf32>
    %35 = vector.extract_strided_slice %34 {offsets = [0, 0], sizes = [8, 32], strides = [1, 1]} : vector<8x64xf32> to vector<8x32xf32>
    %cst_20 = arith.constant 5.000000e+00 : f32
    %36 = vector.broadcast %cst_20 : f32 to vector<8x32xf32>
    %37 = arith.mulf %35, %36 : vector<8x32xf32>
    %38 = arith.addf %0, %37 : vector<8x32xf32>
    %c0_21 = arith.constant 0 : index
    %c0_22 = arith.constant 0 : index
    %39 = vector.load %arg3[%c0_21, %c0_22] : memref<8x32xf32, #tpu.memory_space<vmem>>, vector<8x32xf32>
    tpu.vector_store %arg3[%c0_21, %c0_22], %38 {strides = array<i32>} : memref<8x32xf32, #tpu.memory_space<vmem>>, vector<8x32xf32>,
    return
  }
  func.func @transform_0(%arg0: i32) -> (i32, i32) {
    %c0_i32 = arith.constant 0 : i32
    %c0_i32_0 = arith.constant 0 : i32
    return %arg0, %c0_i32 : i32, i32
  }
  func.func @transform_1(%arg0: i32) -> (i32, i32) {
    %c0_i32 = arith.constant 0 : i32
    %c0_i32_0 = arith.constant 0 : i32
    %c0_i32_1 = arith.constant 0 : i32
    return %c0_i32, %c0_i32_0 : i32, i32
  }
  func.func @transform_2(%arg0: i32) -> (i32, i32) {
    %c0_i32 = arith.constant 0 : i32
    %c0_i32_0 = arith.constant 0 : i32
    return %arg0, %c0_i32 : i32, i32
  }
}

</mosaic_0001>

<bundles_post_ra>
// kernel: adversarial_generator_forward.1
= control target key start
LH: loop header
LB: loop body
LE: loop exit
PB: predicated region body
PF: predicated region fallthrough
CT: control target
= control target key end

     0   :  { %v685_v3 = vmov 0.0|0.0   ;;  %vm686_vm0 = vmmov 0   ;;  %v687_v6 = vmov 0.0   ;;  %s880_s0 = inlined_call_operand.vmem [shape: f32[8,32], index: 0, kind: input, shape index: {}]   ;;  %s881_s1 = inlined_call_operand.vmem [shape: f32[296,64], index: 1, kind: input, shape index: {}]   ;;  %s882_s2 = inlined_call_operand.hbm [shape: f32[8,32], index: 2, kind: output, shape index: {}]  }
   0x1   :  { %v13_v0 = vld [vmem:[%s881_s1] sm:$0xff]  ;;  %v14_v1 = vld [vmem:[%s881_s1 + $0x8] sm:$0xff]  ;;  %v15_v2 = vld [vmem:[%s881_s1 + $0x10] sm:$0xff]  ;;  %601 = vmatprep.subr.bf16.mxu0 %v685_v3  ;;  %522 = vmatprep.mubr.msk.f32.mxu0 %vm686_vm0, %v687_v6 }
   0x2   :  { %v602_v4 = vpack.c.bf16 %v14_v1, %v13_v0  ;;  %v16_v5 = vld [vmem:[%s881_s1 + $0x18] sm:$0xff]  ;;  %v97_v7 = vld [vmem:[%s881_s1 + $0x20] sm:$0xff]  ;;  %607 = vmatprep.subr.bf16.mxu1 %v685_v3  ;;  %v98_v8 = vld [vmem:[%s881_s1 + $0x28] sm:$0xff]  ;;  %541 = vmatprep.mubr.msk.f32.mxu1 %vm686_vm0, %v687_v6 }
   0x3   :  { %v99_v9 = vld [vmem:[%s881_s1 + $0x30] sm:$0xff]  ;;  %v100_v10 = vld [vmem:[%s881_s1 + $0x38] sm:$0xff]  ;;  %v605_v11 = vpack.c.bf16 %v16_v5, %v15_v2  ;;  %v608_v12 = vpack.c.bf16 %v98_v8, %v97_v7 }
   0x4   :  { %603 = vmatpush3.bf16.msra.mxu0 %v602_v4 }
   0x5   :  { %604 = vmatprep.subr.bf16.mxu0 %v685_v3 }
   0x6   :  { %7 = vsyncpa [#allocation3], 0  ;;  %609 = vmatpush3.bf16.msra.mxu1 %v608_v12  ;;  %v611_v13 = vpack.c.bf16 %v100_v10, %v99_v9  ;;  %v101_v14 = vld [vmem:[%s881_s1 + $0x40] sm:$0xff]  ;;  %v102_v15 = vld [vmem:[%s881_s1 + $0x48] sm:$0xff]  ;;  %vm22_vm1 = vcmask 261120   ;;  %vm110_vm2 = vcmask 523264  }
   0x7   :  { %610 = vmatprep.subr.bf16.mxu1 %v685_v3  ;;  %v745_v16 = vld [vmem:[%s880_s0] sm:$0xff]  ;;  %v614_v17 = vpack.c.bf16 %v102_v15, %v101_v14  ;;  %v103_v18 = vld [vmem:[%s881_s1 + $0x50] sm:$0xff]  ;;  %v104_v19 = vld [vmem:[%s881_s1 + $0x58] sm:$0xff]  ;;  %s688_s6 = smov [#allocation2]  }
   0x8   :  { %606 = vmatpush3.bf16.msra.mxu0 %v605_v11  ;;  %v617_v20 = vpack.c.bf16 %v104_v19, %v103_v18  ;;  %v185_v21 = vld [vmem:[%s881_s1 + $0x60] sm:$0xff]  ;;  %v186_v22 = vld [vmem:[%s881_s1 + $0x68] sm:$0xff]  ;;  %v187_v23 = vld [vmem:[%s881_s1 + $0x70] sm:$0xff]  ;;  %s455_s7 = sshll.u32 %s688_s6, 4  ;;  %s456_s7 = int_to_ptr.vmem [resolvable:$true] %s455_s7 }
   0x9   :  { %619 = vmatprep.subr.bf16.mxu0 %v685_v3  ;;  %v620_v24 = vpack.c.bf16 %v186_v22, %v185_v21  ;;  %v188_v25 = vld [vmem:[%s881_s1 + $0x78] sm:$0xff]  ;;  %v189_v27 = vld [vmem:[%s881_s1 + $0x80] sm:$0xff]  ;;  %v190_v28 = vld [vmem:[%s881_s1 + $0x88] sm:$0xff]  ;;  %s661_s8 = scalar_lea.vmem %s456_s7, 128  ;;  %p666_p1 = scmp.lt.s32.totalorder %s456_s7, %s456_s7 }
   0xa   :  { %612 = vmatpush3.bf16.msra.mxu1 %v611_v13  ;;  %v623_v26 = vpack.c.bf16 %v188_v25, %v187_v23  ;;  %v626_v29 = vpack.c.bf16 %v190_v28, %v189_v27  ;;  %v463_v30 = vld [vmem:[%s881_s1 + $0x120] ss:$0 sm:$0xff]  ;;  %v191_v35 = vld [vmem:[%s881_s1 + $0x90] sm:$0xff]  ;;  %v192_v36 = vld [vmem:[%s881_s1 + $0x98] sm:$0xff]  ;;  %p662_p0 = scmp.ne.s32.totalorder %s456_s7, %s661_s8  ;;  %p667_p2 = scmp.lt.s32.totalorder %s661_s8, %s661_s8 }
   0xb   :  { %523 = vmatmul.mubr.msk.f32.vlgmr.msra.gmra.mrb[0].mxu0 %vm22_vm1, %v745_v16  ;;  %613 = vmatprep.subr.bf16.mxu1 %v685_v3  ;;  %v629_v37 = vpack.c.bf16 %v192_v36, %v191_v35  ;;  %v272_v38 = vld [vmem:[%s881_s1 + $0xa0] sm:$0xff]  ;;  %v273_v39 = vld [vmem:[%s881_s1 + $0xa8] sm:$0xff]  ;;  %v274_v40 = vld [vmem:[%s881_s1 + $0xb0] sm:$0xff] }
   0xc   :  { %560 = vmatprep.mubr.msk.f32.mxu0 %vm686_vm0, %v687_v6  ;;  %621 = vmatpush3.bf16.msra.mxu0 %v620_v24  ;;  %v632_v41 = vpack.c.bf16 %v273_v39, %v272_v38  ;;  %v275_v42 = vld [vmem:[%s881_s1 + $0xb8] sm:$0xff]  ;;  %v276_v44 = vld [vmem:[%s881_s1 + $0xc0] sm:$0xff]  ;;  %v277_v45 = vld [vmem:[%s881_s1 + $0xc8] sm:$0xff]  ;;  %p668_p3 = por %p667_p2, %p666_p1 }
   0xd   :  { %622 = vmatprep.subr.bf16.mxu0 %v685_v3  ;;  %v635_v43 = vpack.c.bf16 %v275_v42, %v274_v40  ;;  %v638_v46 = vpack.c.bf16 %v277_v45, %v276_v44  ;;  %v465_v47 = vld [vmem:[%s881_s1 + $0x121] ss:$0 sm:$0xff]  ;;  %v278_v52 = vld [vmem:[%s881_s1 + $0xd0] sm:$0xff]  ;;  %v279_v53 = vld [vmem:[%s881_s1 + $0xd8] sm:$0xff] }
   0xe   :  { %615 = vmatpush3.bf16.msra.mxu1 %v614_v17  ;;  %v641_v54 = vpack.c.bf16 %v279_v53, %v278_v52  ;;  %v359_v55 = vld [vmem:[%s881_s1 + $0xe0] sm:$0xff]  ;;  %v360_v56 = vld [vmem:[%s881_s1 + $0xe8] sm:$0xff]  ;;  %v361_v57 = vld [vmem:[%s881_s1 + $0xf0] sm:$0xff]  ;;  %p669_p4 = pnand %p668_p3, %p662_p0 }
   0xf   :  { %616 = vmatprep.subr.bf16.mxu1 %v685_v3  ;;  %v644_v58 = vpack.c.bf16 %v360_v56, %v359_v55  ;;  %v362_v59 = vld [vmem:[%s881_s1 + $0xf8] sm:$0xff]  ;;  %v363_v61 = vld [vmem:[%s881_s1 + $0x100] sm:$0xff]  ;;  %v364_v62 = vld [vmem:[%s881_s1 + $0x108] sm:$0xff] }
  0x10   :  { %624 = vmatpush3.bf16.msra.mxu0 %v623_v26  ;;  %v647_v60 = vpack.c.bf16 %v362_v59, %v361_v57  ;;  %v650_v63 = vpack.c.bf16 %v364_v62, %v363_v61  ;;  %v467_v0 = vld [vmem:[%s881_s1 + $0x122] ss:$0 sm:$0xff]  ;;  %v366_v7 = vld [vmem:[%s881_s1 + $0x118] sm:$0xff]  ;;  %v471_v13 = vld [vmem:[%s881_s1 + $0x124] ss:$0 sm:$0xff] }
  0x11   :  { %625 = vmatprep.subr.bf16.mxu0 %v685_v3 }
  0x12   :  { %618 = vmatpush3.bf16.msra.mxu1 %v617_v20 }
  0x13   :  { %631 = vmatprep.subr.bf16.mxu1 %v685_v3 }
  0x14   :  { %627 = vmatpush3.bf16.msra.mxu0 %v626_v29 }
  0x15   :  { %628 = vmatprep.subr.bf16.mxu0 %v685_v3 }
  0x18   :  { %630 = vmatpush3.bf16.msra.mxu0 %v629_v37 }
  0x19   :  { %643 = vmatprep.subr.bf16.mxu0 %v685_v3 }
  0xde   :  { %v92_v31 = vpop.f32.mrb[0].mxu0 }
  0xdf   :  { %v93_v32 = vadd.f32 %v463_v30, %v92_v31  ;;  %v524_v33 = vpop.f32.mrb[1].mxu0 }
  0xe1   :  { %v96_v34 = vmax.f32 %v93_v32, 0.0 }
  0xe3   :  { %542 = vmatmul.mubr.msk.f32.vlgmr.msra.gmra.mrb[0].mxu1 %vm110_vm2, %v96_v34 }
  0xe4   :  { %579 = vmatprep.mubr.msk.f32.mxu1 %vm686_vm0, %v687_v6  ;;  %633 = vmatpush3.bf16.msra.mxu1 %v632_v41 }
  0xe5   :  { %634 = vmatprep.subr.bf16.mxu1 %v685_v3 }
  0xe8   :  { %636 = vmatpush3.bf16.msra.mxu1 %v635_v43 }
  0xe9   :  { %637 = vmatprep.subr.bf16.mxu1 %v685_v3 }
  0xec   :  { %639 = vmatpush3.bf16.msra.mxu1 %v638_v46 }
  0xed   :  { %640 = vmatprep.subr.bf16.mxu1 %v685_v3 }
  0xf0   :  { %642 = vmatpush3.bf16.msra.mxu1 %v641_v54 }
 0x1b6   :  { %v180_v48 = vpop.f32.mrb[0].mxu1 }
 0x1b7   :  { %v181_v49 = vadd.f32 %v465_v47, %v180_v48  ;;  %v543_v50 = vpop.f32.mrb[1].mxu1 }
 0x1b9   :  { %v184_v51 = vmax.f32 %v181_v49, 0.0 }
 0x1bb   :  { %561 = vmatmul.mubr.msk.f32.vlgmr.msra.gmra.mrb[2].mxu0 %vm110_vm2, %v184_v51 }
 0x1bc   :  { %598 = vmatprep.mubr.msk.f32.mxu0 %vm686_vm0, %v687_v6  ;;  %645 = vmatpush3.bf16.msra.mxu0 %v644_v58  ;;  %v365_v6 = vld [vmem:[%s881_s1 + $0x110] sm:$0xff] }
 0x1bd   :  { %646 = vmatprep.subr.bf16.mxu0 %v685_v3  ;;  %v653_v8 = vpack.c.bf16 %v366_v7, %v365_v6 }
 0x1c0   :  { %648 = vmatpush3.bf16.msra.mxu0 %v647_v60 }
 0x1c1   :  { %649 = vmatprep.subr.bf16.mxu0 %v685_v3 }
 0x1c4   :  { %651 = vmatpush3.bf16.msra.mxu0 %v650_v63 }
 0x1c5   :  { %652 = vmatprep.subr.bf16.mxu0 %v685_v3  ;;  %v469_v3 = vld [vmem:[%s881_s1 + $0x123] ss:$0 sm:$0xff] }
 0x1c8   :  { %654 = vmatpush3.bf16.msra.mxu0 %v653_v8 }
 0x28e   :  { %v267_v1 = vpop.f32.mrb[2].mxu0 }
 0x28f   :  { %v268_v2 = vadd.f32 %v467_v0, %v267_v1  ;;  %v562_v4 = vpop.f32.mrb[3].mxu0 }
 0x291   :  { %v271_v5 = vmax.f32 %v268_v2, 0.0 }
 0x293   :  { %580 = vmatmul.mubr.msk.f32.vlgmr.msra.gmra.mrb[2].mxu1 %vm110_vm2, %v271_v5 }
 0x366   :  { %v354_v9 = vpop.f32.mrb[2].mxu1 }
 0x367   :  { %v355_v10 = vadd.f32 %v469_v3, %v354_v9  ;;  %v581_v11 = vpop.f32.mrb[3].mxu1 }
 0x369   :  { %v358_v12 = vmax.f32 %v355_v10, 0.0 }
 0x36b   :  { %599 = vmatmul.mubr.msk.f32.vlgmr.msra.gmra.mrb[4].mxu0 %vm110_vm2, %v358_v12 }
 0x43e   :  { %v441_v14 = vpop.f32.mrb[4].mxu0 }
 0x43f   :  { %v442_v15 = vadd.f32 %v471_v13, %v441_v14  ;;  %v600_v17 = vpop.f32.mrb[5].mxu0 }
 0x441   :  { %659 = vtanh.f32 %v442_v15 }
 0x44b   :  { %v660_v18 = vpop.eup %659 }
 0x44c   :  { %v446_v19 = vmul.f32 5.0, %v660_v18 }
 0x44e   :  { %v447_v20 = vadd.f32 %v446_v19, %v745_v16 }
 0x450   :  { %448 = vst.msk [vmem:[#allocation2] sm:$0xff] %vm22_vm1, %v447_v20 }
 0x451   :  { %672 = shalt.err (!%p669_p4)
}
 0x452   :  { %s673_s10 = scalar_lea.hbm %s882_s2, 128 }
 0x453   :  { %p674_p5 = scmp.ne.s32.totalorder %s882_s2, %s673_s10  ;;  %p677_p6 = scmp.lt.u32.totalorder %s673_s10, %s882_s2 }
 0x455   :  { %p679_p7 = pnand %p677_p6, %p674_p5 }
 0x457   :  { %682 = shalt.err (!%p679_p7)
}
 0x458   :  { %458 = dma.vmem_to_hbm [thread:$0]  %s456_s7, 128, %s882_s2, [#allocation3]  }
 0x459   :  { %683 = dma.done.wait [#allocation3], 128  }
 0x45a   :  { %684 = vsyncadd [#allocation3], 4294967168 }
 0x45b   :  { %462 = vsyncpa [#allocation3], 1 }

</bundles_post_ra>
